<compile_context>
chip_gen: v6e
topology: v6e:2x2x1
jax: 0.10.0
libtpu: 0.0.40
codegen_flags: <defaults>
</compile_context>

<pallas_src>
import functools

import jax
import jax.numpy as jnp
from jax.experimental import pallas as pl
from jax.experimental.pallas import tpu as pltpu


def _round_up(x, m):
    return (x + m - 1) // m * m


def mlp_kernel(x_ref, w1_ref, b1_ref, w2_ref, b2_ref, o_ref):
    # Layer 1: bf16 operands on the MXU, f32 accumulate, f32 bias + ReLU on the VPU.
    x = x_ref[...].astype(jnp.bfloat16)
    h = jnp.dot(x, w1_ref[...], preferred_element_type=jnp.float32) + b1_ref[...]
    h = jnp.maximum(h, 0.0)
    # Layer 2.
    out = jnp.dot(h.astype(jnp.bfloat16), w2_ref[...],
                  preferred_element_type=jnp.float32) + b2_ref[...]
    o_ref[...] = out.astype(o_ref.dtype)


def prepare_params(w1, b1, w2, b2):
    """One-time parameter prep (NOT in the per-call hot path).

    - Transposes PyTorch Linear [out, in] weights to [in, out].
    - Zero-pads hidden (300 -> 384) and output (100 -> 128) to 128-lane multiples
      (padding is mathematically inert: padded weight/bias columns are zero).
    - Casts weights to bf16 for the MXU; biases stay f32 for the f32 epilogue.
    """
    hid, in_dim = w1.shape
    out_dim = w2.shape[0]
    hid_p = _round_up(hid, 128)
    out_p = _round_up(out_dim, 128)

    w1_t = jnp.zeros((in_dim, hid_p), jnp.bfloat16).at[:, :hid].set(
        jnp.transpose(w1).astype(jnp.bfloat16))
    b1_p = jnp.zeros((1, hid_p), jnp.float32).at[:, :hid].set(b1.reshape(1, hid))
    w2_t = jnp.zeros((hid_p, out_p), jnp.bfloat16).at[:hid, :out_dim].set(
        jnp.transpose(w2).astype(jnp.bfloat16))
    b2_p = jnp.zeros((1, out_p), jnp.float32).at[:, :out_dim].set(
        b2.reshape(1, out_dim))
    return w1_t, b1_p, w2_t, b2_p, out_dim


def _choose_batch_tile(B, max_tb=1024):
    """Pick (tb, b_pad).

    Pad the batch only to a multiple of 8 sublanes, then choose the row tile that
    (1) minimizes total padded rows (wasted HBM traffic in a memory-bound kernel),
    (2) prefers >=2 grid steps so "parallel" can use both v7x TensorCores,
    (3) prefers larger tiles (fewer per-grid-step overheads), capped at max_tb.
    """
    b8 = _round_up(B, 8)
    if b8 <= 128:
        return b8, b8  # single small tile, zero extra padding
    best = None
    for tb in (128, 256, 512, 1024):
        if tb > max_tb:
            continue
        b_pad = _round_up(b8, tb)
        steps = b_pad // tb
        key = (b_pad - b8, 0 if steps >= 2 else 1, -tb)
        if best is None or key < best[0]:
            best = (key, tb, b_pad)
    return best[1], best[2]


@functools.partial(jax.jit,
                   static_argnames=("out_dim", "max_tb", "return_padded"))
def network_forward(state, w1_t, b1_p, w2_t, b2_p, *, out_dim, max_tb=1024,
                    return_padded=False):
    """Forward pass: relu(state @ W1 + b1) @ W2 + b2 (params from prepare_params).

    Output dtype matches `state.dtype` (pass bf16 state for bf16 in/out traffic).
    With return_padded=True the (b_pad, 128) padded result is returned (padded rows
    contain bias-valued garbage, padded columns are zero) to skip the slice pass.
    """
    B, in_dim = state.shape
    hid_p = w1_t.shape[1]
    out_p = w2_t.shape[1]

    tb, b_pad = _choose_batch_tile(B, max_tb)
    if b_pad != B:
        state = jnp.pad(state, ((0, b_pad - B), (0, 0)))
    grid = (b_pad // tb,)

    act_bytes = jnp.dtype(state.dtype).itemsize
    cost = pl.CostEstimate(
        flops=2 * b_pad * (in_dim * hid_p + hid_p * out_p),
        transcendentals=0,
        bytes_accessed=(b_pad * in_dim * act_bytes          # x loads
                        + b_pad * out_p * act_bytes          # out stores
                        + (w1_t.size + w2_t.size) * 2        # bf16 weights
                        + (b1_p.size + b2_p.size) * 4))      # f32 biases

    out_padded = pl.pallas_call(
        mlp_kernel,
        out_shape=jax.ShapeDtypeStruct((b_pad, out_p), state.dtype),
        grid_spec=pltpu.PrefetchScalarGridSpec(
            num_scalar_prefetch=0,
            grid=grid,
            in_specs=[
                pl.BlockSpec((tb, in_dim), lambda i: (i, 0)),      # x tile
                pl.BlockSpec((in_dim, hid_p), lambda i: (0, 0)),   # W1 (resident)
                pl.BlockSpec((1, hid_p), lambda i: (0, 0)),        # b1 (resident)
                pl.BlockSpec((hid_p, out_p), lambda i: (0, 0)),    # W2 (resident)
                pl.BlockSpec((1, out_p), lambda i: (0, 0)),        # b2 (resident)
            ],
            out_specs=pl.BlockSpec((tb, out_p), lambda i: (i, 0)),
        ),
        compiler_params=pltpu.CompilerParams(
            dimension_semantics=("parallel",)),
        cost_estimate=cost,
    )(state, w1_t, b1_p, w2_t, b2_p)

    if return_padded:
        return out_padded
    # Strip batch / lane padding.
    return out_padded[:B, :out_dim]


def init_params(key, input_dim, hidden_dim, output_dim):
    """Deterministic init mimicking torch.nn.Linear default (uniform +/- 1/sqrt(fan_in))."""
    k1, k2, k3, k4 = jax.random.split(key, 4)
    lim1 = 1.0 / jnp.sqrt(jnp.float32(input_dim))
    lim2 = 1.0 / jnp.sqrt(jnp.float32(hidden_dim))
    w1 = jax.random.uniform(k1, (hidden_dim, input_dim), jnp.float32, -lim1, lim1)
    b1 = jax.random.uniform(k2, (hidden_dim,), jnp.float32, -lim1, lim1)
    w2 = jax.random.uniform(k3, (output_dim, hidden_dim), jnp.float32, -lim2, lim2)
    b2 = jax.random.uniform(k4, (output_dim,), jnp.float32, -lim2, lim2)
    return w1, b1, w2, b2


if __name__ == "__main__":
    # Shapes consistent with the module name: 100 -> 300 -> 100.
    input_dim, hidden_dim, output_dim = 100, 300, 100

    key = jax.random.PRNGKey(0)
    k_params, k_x = jax.random.split(key)
    w1, b1, w2, b2 = init_params(k_params, input_dim, hidden_dim, output_dim)

    # One-time parameter preparation (outside the hot path).
    w1_t, b1_p, w2_t, b2_p, out_dim = prepare_params(w1, b1, w2, b2)

    # Headline tiny batch (8) plus an awkward batch (300) that exercises the
    # new tile selection (pads to 384 rows / 3 tiles instead of 512 rows).
    for batch in (8, 300):
        state = jax.random.normal(jax.random.fold_in(k_x, batch),
                                  (batch, input_dim), jnp.float32)
        out = network_forward(state, w1_t, b1_p, w2_t, b2_p, out_dim=out_dim)
        out = jax.block_until_ready(out)

        # Reference check (plain f32 JAX). Kernel uses bf16 matmul operands with
        # f32 accumulation, so compare with a bf16-appropriate tolerance.
        ref = jnp.maximum(state @ w1.T + b1, 0.0) @ w2.T + b2
        assert out.shape == (batch, output_dim)
        max_err = float(jnp.max(jnp.abs(out - ref)))
        assert jnp.allclose(out, ref, atol=5e-2, rtol=5e-2), max_err

    print("KERNEL_OK")
</pallas_src>

<mosaic_0001>
module attributes {stable_mosaic.version = 11 : i64} {
  func.func @mlp_kernel(%arg0: i32, %arg1: memref<8x100xf32, #tpu.memory_space<vmem>>, %arg2: memref<100x384xbf16, #tpu.memory_space<vmem>>, %arg3: memref<1x384xf32, #tpu.memory_space<vmem>>, %arg4: memref<384x128xbf16, #tpu.memory_space<vmem>>, %arg5: memref<1x128xf32, #tpu.memory_space<vmem>>, %arg6: memref<8x128xf32, #tpu.memory_space<vmem>>) attributes {dimension_semantics = [#tpu.dimension_semantics<parallel>], iteration_bounds = array<i64: 1>, scalar_prefetch = 0 : i64, scratch_operands = 0 : i64, tpu.core_type = #tpu.core_type<tc>, window_params = [{transform_indices = @transform_0, window_bounds = array<i64: 8, 100>}, {pipeline_mode = #tpu.pipeline_mode<synchronous>, transform_indices = @transform_1, window_bounds = array<i64: 100, 384>}, {pipeline_mode = #tpu.pipeline_mode<synchronous>, transform_indices = @transform_2, window_bounds = array<i64: 1, 384>}, {pipeline_mode = #tpu.pipeline_mode<synchronous>, transform_indices = @transform_3, window_bounds = array<i64: 384, 128>}, {pipeline_mode = #tpu.pipeline_mode<synchronous>, transform_indices = @transform_4, window_bounds = array<i64: 1, 128>}, {transform_indices = @transform_5, window_bounds = array<i64: 8, 128>}]} {
    %c0 = arith.constant 0 : index
    %c0_0 = arith.constant 0 : index
    %0 = vector.load %arg1[%c0, %c0_0] : memref<8x100xf32, #tpu.memory_space<vmem>>, vector<8x100xf32>
    %1 = arith.truncf %0 : vector<8x100xf32> to vector<8x100xbf16>
    %c0_1 = arith.constant 0 : index
    %c0_2 = arith.constant 0 : index
    %2 = vector.load %arg2[%c0_1, %c0_2] : memref<100x384xbf16, #tpu.memory_space<vmem>>, vector<100x384xbf16>
    %cst = arith.constant dense<0.000000e+00> : vector<8x384xf32>
    %3 = tpu.matmul %1, %2, %cst {dimension_numbers = #tpu.dot_dimension_numbers<[1], [0], [0], [1], [0, 0, 1, 1], [], []>} : vector<8x100xbf16>, vector<100x384xbf16>, vector<8x384xf32> -> vector<8x384xf32>
    %c0_3 = arith.constant 0 : index
    %c0_4 = arith.constant 0 : index
    %4 = vector.load %arg3[%c0_3, %c0_4] : memref<1x384xf32, #tpu.memory_space<vmem>>, vector<1x384xf32>
    %5 = vector.broadcast %4 : vector<1x384xf32> to vector<8x384xf32>
    %6 = arith.addf %3, %5 : vector<8x384xf32>
    %cst_5 = arith.constant 0.000000e+00 : f32
    %7 = vector.broadcast %cst_5 : f32 to vector<8x384xf32>
    %8 = arith.maximumf %6, %7 : vector<8x384xf32>
    %9 = arith.truncf %8 : vector<8x384xf32> to vector<8x384xbf16>
    %c0_6 = arith.constant 0 : index
    %c0_7 = arith.constant 0 : index
    %10 = vector.load %arg4[%c0_6, %c0_7] : memref<384x128xbf16, #tpu.memory_space<vmem>>, vector<384x128xbf16>
    %cst_8 = arith.constant dense<0.000000e+00> : vector<8x128xf32>
    %11 = tpu.matmul %9, %10, %cst_8 {dimension_numbers = #tpu.dot_dimension_numbers<[1], [0], [0], [1], [0, 0, 1, 1], [], []>} : vector<8x384xbf16>, vector<384x128xbf16>, vector<8x128xf32> -> vector<8x128xf32>
    %c0_9 = arith.constant 0 : index
    %c0_10 = arith.constant 0 : index
    %12 = vector.load %arg5[%c0_9, %c0_10] : memref<1x128xf32, #tpu.memory_space<vmem>>, vector<1x128xf32>
    %13 = vector.broadcast %12 : vector<1x128xf32> to vector<8x128xf32>
    %14 = arith.addf %11, %13 : vector<8x128xf32>
    %c0_11 = arith.constant 0 : index
    %c0_12 = arith.constant 0 : index
    %15 = vector.load %arg6[%c0_11, %c0_12] : memref<8x128xf32, #tpu.memory_space<vmem>>, vector<8x128xf32>
    tpu.vector_store %arg6[%c0_11, %c0_12], %14 {strides = array<i32>} : memref<8x128xf32, #tpu.memory_space<vmem>>, vector<8x128xf32>,
    return
  }
  func.func @transform_0(%arg0: i32) -> (i32, i32) {
    %c0_i32 = arith.constant 0 : i32
    %c0_i32_0 = arith.constant 0 : i32
    return %arg0, %c0_i32 : i32, i32
  }
  func.func @transform_1(%arg0: i32) -> (i32, i32) {
    %c0_i32 = arith.constant 0 : i32
    %c0_i32_0 = arith.constant 0 : i32
    %c0_i32_1 = arith.constant 0 : i32
    return %c0_i32, %c0_i32_0 : i32, i32
  }
  func.func @transform_2(%arg0: i32) -> (i32, i32) {
    %c0_i32 = arith.constant 0 : i32
    %c0_i32_0 = arith.constant 0 : i32
    %c0_i32_1 = arith.constant 0 : i32
    return %c0_i32, %c0_i32_0 : i32, i32
  }
  func.func @transform_3(%arg0: i32) -> (i32, i32) {
    %c0_i32 = arith.constant 0 : i32
    %c0_i32_0 = arith.constant 0 : i32
    %c0_i32_1 = arith.constant 0 : i32
    return %c0_i32, %c0_i32_0 : i32, i32
  }
  func.func @transform_4(%arg0: i32) -> (i32, i32) {
    %c0_i32 = arith.constant 0 : i32
    %c0_i32_0 = arith.constant 0 : i32
    %c0_i32_1 = arith.constant 0 : i32
    return %c0_i32, %c0_i32_0 : i32, i32
  }
  func.func @transform_5(%arg0: i32) -> (i32, i32) {
    %c0_i32 = arith.constant 0 : i32
    %c0_i32_0 = arith.constant 0 : i32
    return %arg0, %c0_i32 : i32, i32
  }
}

</mosaic_0001>

<bundles_post_ra>
// kernel: network_forward.1
= control target key start
LH: loop header
LB: loop body
LE: loop exit
PB: predicated region body
PF: predicated region fallthrough
CT: control target
= control target key end

     0   :  { %10 = vsyncpa [#allocation3], 0  ;;  %s959_s0 = inlined_call_operand.hbm [shape: f32[8,100], index: 0, kind: input, shape index: {}]   ;;  %s960_s1 = inlined_call_operand.hbm [shape: bf16[100,384], index: 1, kind: input, shape index: {}]   ;;  %s961_s2 = inlined_call_operand.vmem [shape: f32[1,384], index: 2, kind: input, shape index: {}]   ;;  %s962_s3 = inlined_call_operand.hbm [shape: bf16[384,128], index: 3, kind: input, shape index: {}]   ;;  %s963_s4 = inlined_call_operand.vmem [shape: f32[1,128], index: 4, kind: input, shape index: {}]   ;;  %s964_s5 = inlined_call_operand.hbm [shape: f32[8,128], index: 5, kind: output, shape index: {}]  }
   0x1   :  { %11 = vsyncpa [#allocation6], 0 }
   0x2   :  { %12 = vsyncpa [#allocation4], 0  ;;  %s881_s18 = smov [#allocation5]  }
   0x3   :  { %s28_s19 = sshll.u32 %s881_s18, 4  ;;  %s29_s19 = int_to_ptr.vmem [resolvable:$true] %s28_s19 }
   0x4   :  { %s803_s20 = scalar_lea.vmem %s29_s19, 2496  ;;  %p808_p1 = scmp.lt.s32.totalorder %s29_s19, %s29_s19 }
   0x5   :  { %p804_p0 = scmp.ne.s32.totalorder %s29_s19, %s803_s20  ;;  %p809_p2 = scmp.lt.s32.totalorder %s803_s20, %s803_s20 }
   0x7   :  { %p810_p3 = por %p809_p2, %p808_p1 }
   0x9   :  { %p811_p4 = pnand %p810_p3, %p804_p0 }
   0xb   :  { %814 = shalt.err (!%p811_p4)
}
   0xc   :  { %s882_s21 = smov 192   ;;  %s883_s22 = smov 12  }
   0xd   :  { %34 = dma.hbm_to_vmem [thread:$0]  %s960_s1, 2496, %s29_s19, [#allocation6], %s882_s21, %s882_s21, %s883_s22  }
   0xe   :  { %s884_s25 = smov [#allocation2]   ;;  %s885_s27 = smov [#allocation7]  }
   0xf   :  { %s19_s26 = sshll.u32 %s884_s25, 4  ;;  %s42_s28 = sshll.u32 %s885_s27, 4  ;;  %s20_s26 = int_to_ptr.vmem [resolvable:$true] %s19_s26  ;;  %s43_s28 = int_to_ptr.vmem [resolvable:$true] %s42_s28 }
  0x10   :  { %s823_s29 = scalar_lea.vmem %s20_s26, 128  ;;  %p828_p6 = scmp.lt.s32.totalorder %s20_s26, %s20_s26 }
  0x11   :  { %p824_p5 = scmp.ne.s32.totalorder %s20_s26, %s823_s29  ;;  %p829_p7 = scmp.lt.s32.totalorder %s823_s29, %s823_s29 }
  0x13   :  { %p830_p8 = por %p829_p7, %p828_p6 }
  0x15   :  { %p831_p9 = pnand %p830_p8, %p824_p5 }
  0x17   :  { %834 = shalt.err (!%p831_p9)
}
  0x18   :  { %22 = dma.hbm_to_vmem [thread:$0]  %s959_s0, 128, %s20_s26, [#allocation3]  }
  0x19   :  { %s843_s7 = scalar_lea.vmem %s43_s28, 3072  ;;  %p848_p11 = scmp.lt.s32.totalorder %s43_s28, %s43_s28 }
  0x1a   :  { %p844_p10 = scmp.ne.s32.totalorder %s43_s28, %s843_s7  ;;  %p849_p12 = scmp.lt.s32.totalorder %s843_s7, %s843_s7 }
  0x1c   :  { %p850_p13 = por %p849_p12, %p848_p11 }
  0x1e   :  { %p851_p0 = pnand %p850_p13, %p844_p10 }
  0x20   :  { %854 = shalt.err (!%p851_p0)
}
  0x21   :  { %s886_s1 = smov 64   ;;  %s887_s8 = smov 4  }
  0x22   :  { %48 = dma.hbm_to_vmem [thread:$0]  %s962_s3, 3072, %s43_s28, [#allocation6], %s886_s1, %s886_s1, %s887_s8  }
  0x23   :  { %875 = dma.done.wait [#allocation3], 128  }
  0x24   :  { %876 = vsyncadd [#allocation3], 4294967168 }
  0x25   :  { %877 = dma.done.wait [#allocation6], 5568  }
  0x26   :  { %878 = vsyncadd [#allocation6], 4294961728  ;;  %v888_v0 = vmov 0.0   ;;  %v889_v1 = vmov 0   ;;  %vm890_vm0 = vmmov 0   ;;  %vm214_vm1 = vcmask 1041408  }
  0x27   :  { %695 = vmatprep.subr.bf16.mxu1 %v888_v0  ;;  %256 = vmatprep.mubr.bf16.mxu0 %v889_v1  ;;  %v87_v2 = vld [vmem:[#allocation5 + $0x90] sm:$0x33]  ;;  %v746_v5 = vld [vmem:[#allocation5 + $0x98] ss:$0 sps:$4 sm:$0x33]   ;;  %vm210_vm2 = vcmask 818176   ;;  %v91_v52 = vlaneseq }
  0x28   :  { %709 = vmatprep.mubr.msk.bf16.mxu1 %vm890_vm0, %v888_v0  ;;  %v626_v3 = vcombine.high %v87_v2, %v87_v2  ;;  %v625_v4 = vcombine.low %v87_v2, %v87_v2  ;;  %v747_v6 = vld [vmem:[#allocation5 + $0x7c] ss:$12 sps:$4 sm:$0xff]   ;;  %v222_v8 = vsel %vm214_vm1, %v746_v5, 0  ;;  %v749_v9 = vld [vmem:[#allocation5 + $0x78] ss:$12 sps:$4 sm:$0xff]   ;;  %v775_v31 = vld [vmem:[#allocation7 + $0x70] sm:$0xff]  }
  0x29   :  { %696 = vmatpush3.bf16.msra.mxu1 %v222_v8  ;;  %v750_v10 = vld [vmem:[#allocation5 + $0x80] ss:$12 sps:$4 sm:$0xff]   ;;  %v751_v11 = vld [vmem:[#allocation5 + $0x64] ss:$12 sps:$4 sm:$0xff]   ;;  %v754_v13 = vld [vmem:[#allocation5 + $0x68] ss:$12 sps:$4 sm:$0xff]  }
  0x2a   :  { %628 = vmatprep.subr.msk.bf16.mxu0 %vm214_vm1, %v626_v3  ;;  %v216_v7 = vsel %vm214_vm1, %v625_v4, 0  ;;  %697 = vmatprep.subr.bf16.mxu1 %v888_v0  ;;  %v753_v12 = vld [vmem:[#allocation5 + $0x60] ss:$12 sps:$4 sm:$0xff]   ;;  %v757_v15 = vld [vmem:[#allocation5 + $0x48] ss:$12 sps:$4 sm:$0xff]   ;;  %v61_v26 = vld [vmem:[#allocation2] sm:$0xff] }
  0x2b   :  { %227 = vmatpush1.bf16.msra.mxu0 %v216_v7  ;;  %v755_v14 = vld [vmem:[#allocation5 + $0x4c] ss:$12 sps:$4 sm:$0xff]   ;;  %v758_v16 = vld [vmem:[#allocation5 + $0x50] ss:$12 sps:$4 sm:$0xff]   ;;  %v759_v17 = vld [vmem:[#allocation5 + $0x34] ss:$12 sps:$4 sm:$0xff]   ;;  %v62_v28 = vpack.c.bf16 %v61_v26, %v61_v26 }
  0x2c   :  { %228 = vmatprep.subr.bf16.mxu0 %v747_v6  ;;  %v761_v18 = vld [vmem:[#allocation5 + $0x30] ss:$12 sps:$4 sm:$0xff]   ;;  %v762_v19 = vld [vmem:[#allocation5 + $0x38] ss:$12 sps:$4 sm:$0xff]   ;;  %v766_v22 = vld [vmem:[#allocation5 + $0x20] ss:$12 sps:$4 sm:$0xff]  }
  0x2d   :  { %698 = vmatpush3.bf16.msra.mxu1 %v750_v10  ;;  %v763_v20 = vld [vmem:[#allocation5 + $0x1c] ss:$12 sps:$4 sm:$0xff]   ;;  %v765_v21 = vld [vmem:[#allocation5 + $0x18] ss:$12 sps:$4 sm:$0xff]   ;;  %v769_v24 = vld [vmem:[#allocation5] ss:$12 sps:$4 sm:$0xff]  }
  0x2e   :  { %699 = vmatprep.subr.bf16.mxu1 %v888_v0  ;;  %v767_v23 = vld [vmem:[#allocation5 + $0x4] ss:$12 sps:$4 sm:$0xff]   ;;  %v770_v25 = vld [vmem:[#allocation5 + $0x8] ss:$12 sps:$4 sm:$0xff]   ;;  %v781_v37 = vld [vmem:[#allocation7 + $0x60] sm:$0xff]   ;;  %v92_v53 = vshrl.u32 %v91_v52, 7 }
  0x2f   :  { %229 = vmatpush1.bf16.msra.mxu0 %v749_v9  ;;  %v772_v27 = vld [vmem:[#allocation7 + $0x78] sm:$0xff]   ;;  %v774_v32 = vld [vmem:[#allocation7 + $0xb0] sm:$0xff]   ;;  %v778_v34 = vld [vmem:[#allocation7 + $0x68] sm:$0xff]   ;;  %s891_s12 = smov [#allocation8]  }
  0x30   :  { %230 = vmatprep.subr.bf16.mxu0 %v751_v11  ;;  %v771_v29 = vld [vmem:[#allocation7 + $0xb8] sm:$0xff]   ;;  %v776_v33 = vld [vmem:[#allocation7 + $0x30] sm:$0xff]   ;;  %v777_v35 = vld [vmem:[#allocation7 + $0xa8] sm:$0xff]   ;;  %v93_v54 = vsub.s32 0, %v92_v53  ;;  %v101_v55 = vsub.s32 2, %v92_v53  ;;  %v97_v57 = vsub.s32 1, %v92_v53 }
  0x31   :  { %700 = vmatpush3.bf16.msra.mxu1 %v754_v13  ;;  %v773_v30 = vld [vmem:[#allocation7 + $0x38] sm:$0xff]   ;;  %v779_v36 = vld [vmem:[#allocation7 + $0x28] sm:$0xff]   ;;  %v780_v38 = vld [vmem:[#allocation7 + $0xa0] sm:$0xff]   ;;  %s597_s13 = sshll.u32 %s891_s12, 4  ;;  %s598_s13 = int_to_ptr.vmem [resolvable:$true] %s597_s13 }
  0x32   :  { %701 = vmatprep.subr.bf16.mxu1 %v888_v0  ;;  %v782_v39 = vld [vmem:[#allocation7 + $0x20] sm:$0xff]   ;;  %v784_v40 = vld [vmem:[#allocation7 + $0x58] sm:$0xff]   ;;  %v787_v43 = vld [vmem:[#allocation7 + $0x50] sm:$0xff]   ;;  %s855_s14 = scalar_lea.vmem %s598_s13, 128  ;;  %p860_p2 = scmp.lt.s32.totalorder %s598_s13, %s598_s13 }
  0x33   :  { %231 = vmatpush1.bf16.msra.mxu0 %v753_v12  ;;  %v783_v41 = vld [vmem:[#allocation7 + $0x98] sm:$0xff]   ;;  %v786_v44 = vld [vmem:[#allocation7 + $0x90] sm:$0xff]   ;;  %v789_v46 = vld [vmem:[#allocation7 + $0x88] sm:$0xff]   ;;  %p856_p1 = scmp.ne.s32.totalorder %s598_s13, %s855_s14  ;;  %p861_p3 = scmp.lt.s32.totalorder %s855_s14, %s855_s14 }
  0x34   :  { %232 = vmatprep.subr.bf16.mxu0 %v755_v14  ;;  %v785_v42 = vld [vmem:[#allocation7 + $0x18] sm:$0xff]   ;;  %v788_v45 = vld [vmem:[#allocation7 + $0x10] sm:$0xff]   ;;  %v790_v47 = vld [vmem:[#allocation7 + $0x48] sm:$0xff]  }
  0x35   :  { %702 = vmatpush3.bf16.msra.mxu1 %v758_v16  ;;  %v791_v48 = vld [vmem:[#allocation7 + $0x8] sm:$0xff]   ;;  %v792_v49 = vld [vmem:[#allocation7 + $0x80] sm:$0xff]   ;;  %v89_v56 = vld [vmem:[%s961_s2] sm:$0x7]  ;;  %p862_p4 = por %p861_p3, %p860_p2 }
  0x36   :  { %703 = vmatprep.subr.bf16.mxu1 %v888_v0  ;;  %v793_v50 = vld [vmem:[#allocation7 + $0x40] sm:$0xff]   ;;  %v94_v58 = vrot.slane %v89_v56, %v93_v54  ;;  %v102_v59 = vrot.slane %v89_v56, %v101_v55  ;;  %v98_v60 = vrot.slane %v89_v56, %v97_v57 }
  0x37   :  { %233 = vmatpush1.bf16.msra.mxu0 %v757_v15  ;;  %v794_v51 = vld [vmem:[#allocation7] sm:$0xff]   ;;  %p863_p5 = pnand %p862_p4, %p856_p1 }
  0x38   :  { %234 = vmatprep.subr.bf16.mxu0 %v759_v17 }
  0x39   :  { %704 = vmatpush3.bf16.msra.mxu1 %v762_v19 }
  0x3a   :  { %705 = vmatprep.subr.bf16.mxu1 %v888_v0 }
  0x3b   :  { %235 = vmatpush1.bf16.msra.mxu0 %v761_v18  ;;  %v631_v18 = vld [vmem:[%s963_s4] ss:$0 sm:$0xff] }
  0x3c   :  { %236 = vmatprep.subr.bf16.mxu0 %v763_v20 }
  0x3d   :  { %706 = vmatpush3.bf16.msra.mxu1 %v766_v22 }
  0x3e   :  { %707 = vmatprep.subr.bf16.mxu1 %v888_v0 }
  0x3f   :  { %237 = vmatpush1.bf16.msra.mxu0 %v765_v21 }
  0x40   :  { %238 = vmatprep.subr.bf16.mxu0 %v767_v23 }
  0x41   :  { %708 = vmatpush3.bf16.msra.mxu1 %v770_v25 }
  0x42   :  { %713 = vmatprep.subr.bf16.mxu1 %v888_v0 }
  0x43   :  { %239 = vmatpush1.bf16.msra.mxu0 %v769_v24 }
  0x44   :  { %664 = vmatprep.subr.bf16.mxu0 %v772_v27  ;;  %710 = vmatmul.mubr.msk.bf16.vlgmr.msra.gmra.mxu1 %vm210_vm2, %v62_v28 }
  0x45   :  { %714 = vmatpush3.bf16.msra.mxu1 %v771_v29  ;;  %729 = vmatprep.mubr.msk.bf16.mxu1 %vm890_vm0, %v888_v0 }
  0x46   :  { %629 = vmatmul.mubr.msk.bf16.vlgmr.msra.gmra.mxu0 %vm210_vm2, %v62_v28  ;;  %715 = vmatprep.subr.bf16.mxu1 %v888_v0 }
  0x47   :  { %665 = vmatpush3.bf16.msra.mxu0 %v773_v30 }
  0x48   :  { %666 = vmatprep.subr.bf16.mxu0 %v775_v31 }
  0x49   :  { %716 = vmatpush3.bf16.msra.mxu1 %v774_v32 }
  0x4a   :  { %717 = vmatprep.subr.bf16.mxu1 %v888_v0 }
  0x4b   :  { %667 = vmatpush3.bf16.msra.mxu0 %v776_v33 }
  0x4c   :  { %668 = vmatprep.subr.bf16.mxu0 %v778_v34 }
  0x4d   :  { %718 = vmatpush3.bf16.msra.mxu1 %v777_v35 }
  0x4e   :  { %719 = vmatprep.subr.bf16.mxu1 %v888_v0 }
  0x4f   :  { %669 = vmatpush3.bf16.msra.mxu0 %v779_v36 }
  0x50   :  { %670 = vmatprep.subr.bf16.mxu0 %v781_v37 }
  0x51   :  { %720 = vmatpush3.bf16.msra.mxu1 %v780_v38 }
  0x52   :  { %721 = vmatprep.subr.bf16.mxu1 %v888_v0 }
  0x53   :  { %671 = vmatpush3.bf16.msra.mxu0 %v782_v39 }
  0x54   :  { %672 = vmatprep.subr.bf16.mxu0 %v784_v40 }
  0x55   :  { %722 = vmatpush3.bf16.msra.mxu1 %v783_v41 }
  0x56   :  { %723 = vmatprep.subr.bf16.mxu1 %v888_v0 }
  0x57   :  { %673 = vmatpush3.bf16.msra.mxu0 %v785_v42 }
  0x58   :  { %674 = vmatprep.subr.bf16.mxu0 %v787_v43 }
  0x59   :  { %724 = vmatpush3.bf16.msra.mxu1 %v786_v44 }
  0x5a   :  { %725 = vmatprep.subr.bf16.mxu1 %v888_v0 }
  0x5b   :  { %675 = vmatpush3.bf16.msra.mxu0 %v788_v45 }
  0x5c   :  { %676 = vmatprep.subr.bf16.mxu0 %v790_v47 }
  0x5d   :  { %726 = vmatpush3.bf16.msra.mxu1 %v789_v46 }
  0x5e   :  { %727 = vmatprep.subr.bf16.mxu1 %v888_v0 }
  0x5f   :  { %677 = vmatpush3.bf16.msra.mxu0 %v791_v48 }
  0x60   :  { %678 = vmatprep.subr.bf16.mxu0 %v793_v50 }
  0x61   :  { %728 = vmatpush3.bf16.msra.mxu1 %v792_v49 }
  0x63   :  { %679 = vmatpush3.bf16.msra.mxu0 %v794_v51 }
 0x104   :  { %v299_v62 = vpop.f32.mrf.mxu1 }
 0x105   :  { %v300_v0 = vadd.f32 %v299_v62, %v102_v59 }
 0x106   :  { %v258_v61 = vpop.f32.mrf.mxu0  ;;  %v711_v2 = vpop.f32.mrf.mxu1 }
 0x107   :  { %v259_v63 = vadd.f32 %v258_v61, %v94_v58  ;;  %v307_v3 = vmax.f32 %v300_v0, 0.0 }
 0x108   :  { %v260_v1 = vpop.f32.mrf.mxu0  ;;  %v302_v7 = vpop.f32.mrf.mxu1 }
 0x109   :  { %v261_v4 = vadd.f32 %v260_v1, %v98_v60  ;;  %v305_v5 = vmax.f32 %v259_v63, 0.0  ;;  %v310_v8 = vpack.c.bf16 %v307_v3, %v307_v3 }
 0x10a   :  { %v262_v6 = vpop.f32.mrf.mxu0  ;;  %v712_v11 = vpop.f32.mrf.mxu1 }
 0x10b   :  { %v306_v9 = vmax.f32 %v261_v4, 0.0  ;;  %730 = vmatmul.mubr.bf16.vlgmr.msra.gmra.mxu1 %v310_v8  ;;  %v308_v13 = vpack.c.bf16 %v305_v5, %v305_v5 }
 0x10c   :  { %v263_v10 = vpop.f32.mrf.mxu0 }
 0x10d   :  { %v309_v12 = vpack.c.bf16 %v306_v9, %v306_v9 }
 0x10f   :  { %542 = vmatprep.mubr.bf16.mxu0 %v309_v12 }
 0x110   :  { %543 = vmatmul.mubr.bf16.vlgmr.msra.gmra.mxu0 %v308_v13 }
 0x1cb   :  { %v584_v14 = vpop.f32.mrf.mxu1 }
 0x1cd   :  { %v731_v15 = vpop.f32.mrf.mxu1 }
 0x1cf   :  { %v587_v17 = vpop.f32.mrf.mxu1 }
 0x1d0   :  { %v680_v16 = vpop.f32.mrf.mxu0 }
 0x1d1   :  { %v732_v21 = vpop.f32.mrf.mxu1 }
 0x1d2   :  { %v681_v19 = vpop.f32.mrf.mxu0 }
 0x1d3   :  { %v682_v20 = vadd.f32 %v681_v19, %v680_v16 }
 0x1d4   :  { %v683_v22 = vpop.f32.mrf.mxu0 }
 0x1d5   :  { %v545_v23 = vadd.f32 %v682_v20, %v631_v18 }
 0x1d6   :  { %v684_v24 = vpop.f32.mrf.mxu0 }
 0x1d7   :  { %v585_v25 = vadd.f32 %v584_v14, %v545_v23 }
 0x1d9   :  { %590 = vst [vmem:[#allocation8] sm:$0xff] %v585_v25 }
 0x1da   :  { %866 = shalt.err (!%p863_p5)
}
 0x1db   :  { %600 = dma.vmem_to_hbm [thread:$0]  %s598_s13, 128, %s964_s5, [#allocation4]  }
 0x1dc   :  { %879 = dma.done.wait [#allocation4], 128  }
 0x1dd   :  { %880 = vsyncadd [#allocation4], 4294967168 }
 0x1de   :  { %604 = vsyncpa [#allocation3], 1 }
 0x1df   :  { %605 = vsyncpa [#allocation6], 1 }
 0x1e0   :  { %606 = vsyncpa [#allocation4], 1 }

</bundles_post_ra>
